<compile_context>
chip_gen: v7x
topology: tpu7x:2x2x1
jax: 0.10.0
libtpu: 0.0.40
codegen_flags: <defaults>
</compile_context>

<pallas_src>
import functools

import jax
import jax.numpy as jnp
import numpy as np
from jax import lax
from jax.experimental import pallas as pl
from jax.experimental.pallas import tpu as pltpu

BN_EPS = 1e-5
IN_EPS = 1e-5
T_ITERS = 5

VMEM_LIMIT_BYTES = 48 * 1024 * 1024   # > 32 MiB default scope, < v7x 64 MiB


def _compiler_params():
    return pltpu.CompilerParams(dimension_semantics=("parallel",),
                                vmem_limit_bytes=VMEM_LIMIT_BYTES)


def _pick_tile(n, nc=1, target=128):
    """Lane-aligned output-feature tile; falls back to full width."""
    if n % target == 0 and target % nc == 0:
        return target
    return n


# ----------------------------------------------------------------------------
# Kernel 1/2: fused Linear -> BatchNorm1d(train) -> ReLU, N-tiled & parallel
# ----------------------------------------------------------------------------
def _linear_bn_relu_kernel(x_ref, w_ref, b_ref, g_ref, be_ref, o_ref):
    a = x_ref[...]
    if a.dtype != w_ref.dtype:                      # bf16 weight path
        a = a.astype(w_ref.dtype)
    h = jnp.dot(a, w_ref[...],
                preferred_element_type=jnp.float32) + b_ref[...]
    # centered two-pass biased batch statistics (no E[x^2]-mu^2 cancellation)
    mu = jnp.mean(h, axis=0, keepdims=True)
    xm = h - mu
    var = jnp.mean(xm * xm, axis=0, keepdims=True)
    scale = g_ref[...] * lax.rsqrt(var + BN_EPS)
    o_ref[...] = jnp.maximum(xm * scale + be_ref[...], 0.0).astype(o_ref.dtype)


def linear_bn_relu(x, w, b, gamma, beta, *, block_n=128):
    m, k = x.shape
    _, n = w.shape
    tn = _pick_tile(n, target=block_n)
    return pl.pallas_call(
        _linear_bn_relu_kernel,
        out_shape=jax.ShapeDtypeStruct((m, n), w.dtype),
        grid=(n // tn,),
        in_specs=[
            pl.BlockSpec((m, k), lambda j: (0, 0)),    # activations (resident)
            pl.BlockSpec((k, tn), lambda j: (0, j)),   # streamed weight tile
            pl.BlockSpec((1, tn), lambda j: (0, j)),
            pl.BlockSpec((1, tn), lambda j: (0, j)),
            pl.BlockSpec((1, tn), lambda j: (0, j)),
        ],
        out_specs=pl.BlockSpec((m, tn), lambda j: (0, j)),
        compiler_params=_compiler_params(),
    )(x, w, b, gamma, beta)


# ----------------------------------------------------------------------------
# Kernel 3: fused Linear3 -> IterNorm(train) -> affine, group-block tiled
# ----------------------------------------------------------------------------
def _linear_iternorm_kernel(h_ref, w_ref, b_ref, aw_ref, ab_ref, o_ref, *, nc):
    a = h_ref[...]
    if a.dtype != w_ref.dtype:
        a = a.astype(w_ref.dtype)
    x = jnp.dot(a, w_ref[...],
                preferred_element_type=jnp.float32) + b_ref[...]   # (B, FB)
    m, fb = x.shape

    # per-feature mean / centering on the lane-dense (B, FB) tensor
    mu = jnp.mean(x, axis=0, keepdims=True)
    xc = x - mu

    # block-diagonal helpers for this tile (group-aligned, nc static)
    row = lax.broadcasted_iota(jnp.int32, (fb, fb), 0)
    col = lax.broadcasted_iota(jnp.int32, (fb, fb), 1)
    eye = (row == col).astype(jnp.float32)
    gmask = ((row // nc) == (col // nc)).astype(jnp.float32)

    # Sigma = eps*I + (1/B) * blockmask(Xc^T Xc)  -- transposed-LHS MXU dot
    gram = lax.dot_general(xc, xc, (((0,), (0,)), ((), ())),
                           preferred_element_type=jnp.float32)
    sigma = IN_EPS * eye + (1.0 / m) * (gmask * gram)

    # per-group trace -> reciprocal (constant within a group), as a column
    diag = IN_EPS + (1.0 / m) * jnp.sum(xc * xc, axis=0, keepdims=True)  # (1,FB)
    tr = jnp.sum(gmask * diag, axis=1, keepdims=True)                    # (FB,1)
    rtr = 1.0 / tr
    sigma_n = sigma * rtr            # per-block scalar (row broadcast)

    # Newton-Schulz for Sigma^{-1/2}; first iteration peeled (P0 = I)
    p = 1.5 * eye - 0.5 * sigma_n
    for _ in range(T_ITERS - 1):
        p3 = jnp.dot(jnp.dot(p, p, preferred_element_type=jnp.float32), p,
                     preferred_element_type=jnp.float32)
        p = 1.5 * p - 0.5 * jnp.dot(p3, sigma_n,
                                    preferred_element_type=jnp.float32)
    wm = p * jnp.sqrt(rtr)

    # Xn = Xc @ Wm^T  (transposed-RHS dot) -> lane-dense (B, FB) output slab
    xn = lax.dot_general(xc, wm, (((1,), (1,)), ((), ())),
                         preferred_element_type=jnp.float32)
    o_ref[...] = (xn * aw_ref[...] + ab_ref[...]).astype(o_ref.dtype)


def linear_iternorm_affine(h, w, b, in_w, in_b, *, nc, block_f=128):
    m, k = h.shape
    _, f = w.shape
    fb = _pick_tile(f, nc=nc, target=block_f)   # group-aligned feature tile
    kernel = functools.partial(_linear_iternorm_kernel, nc=nc)
    return pl.pallas_call(
        kernel,
        out_shape=jax.ShapeDtypeStruct((m, f), jnp.float32),
        grid=(f // fb,),
        in_specs=[
            pl.BlockSpec((m, k), lambda j: (0, 0)),    # h2 (resident)
            pl.BlockSpec((k, fb), lambda j: (0, j)),   # streamed w3 tile
            pl.BlockSpec((1, fb), lambda j: (0, j)),
            pl.BlockSpec((1, fb), lambda j: (0, j)),
            pl.BlockSpec((1, fb), lambda j: (0, j)),
        ],
        out_specs=pl.BlockSpec((m, fb), lambda j: (0, j)),
        compiler_params=_compiler_params(),
    )(h, w, b, in_w, in_b)


def projector_forward(x, p):
    h = linear_bn_relu(x, p["w1"], p["b1"], p["g1"], p["be1"])
    h = linear_bn_relu(h, p["w2"], p["b2"], p["g2"], p["be2"])
    return linear_iternorm_affine(h, p["w3"], p["b3"],
                                  p["in_weight"], p["in_bias"],
                                  nc=p["iternorm_nc"])


# ----------------------------------------------------------------------------
# Pure-JAX reference (mirrors the PyTorch math) for the correctness check.
# ----------------------------------------------------------------------------
def projector_reference(x, p):
    def bn_relu(h, gamma, beta):
        mu = jnp.mean(h, axis=0, keepdims=True)
        var = jnp.mean((h - mu) ** 2, axis=0, keepdims=True)
        return jnp.maximum((h - mu) * lax.rsqrt(var + BN_EPS) * gamma + beta,
                           0.0)

    h = bn_relu(x @ p["w1"] + p["b1"], p["g1"], p["be1"])
    h = bn_relu(h @ p["w2"] + p["b2"], p["g2"], p["be2"])
    X = h @ p["w3"] + p["b3"]

    B, F = X.shape
    nc = p["iternorm_nc"]
    g = F // nc
    xr = X.T.reshape(g, nc, B)
    mean = xr.mean(-1, keepdims=True)
    xc = xr - mean
    eye = jnp.broadcast_to(jnp.eye(nc, dtype=jnp.float32), (g, nc, nc))
    sigma = IN_EPS * eye + (1.0 / B) * jnp.einsum("gdm,gem->gde", xc, xc)
    rtr = 1.0 / jnp.sum(sigma * eye, axis=(1, 2), keepdims=True)
    sigma_n = sigma * rtr
    pm = eye
    for _ in range(T_ITERS):
        p3 = jnp.einsum("gij,gjk,gkl->gil", pm, pm, pm)
        pm = 1.5 * pm - 0.5 * jnp.einsum("gij,gjk->gik", p3, sigma_n)
    wm = pm * jnp.sqrt(rtr)
    xn = jnp.einsum("gij,gjm->gim", wm, xc)
    out = xn.reshape(F, B).T
    return out * p["in_weight"] + p["in_bias"]


# ----------------------------------------------------------------------------
# Deterministic parameter init (matching the module's shapes / defaults)
# ----------------------------------------------------------------------------
def _iternorm_num_channels(num_features, num_groups=64):
    num_channels = (num_features - 1) // num_groups + 1
    num_groups = num_features // num_channels
    while num_features % num_channels != 0:
        num_channels //= 2
        num_groups = num_features // num_channels
    assert num_groups > 0 and num_features % num_groups == 0
    return num_channels


def make_params(key, out_size_enc, proj_hid, proj_out):
    def lin_init(k, fan_in, fan_out):
        kw, kb = jax.random.split(k)
        bound = 1.0 / np.sqrt(fan_in)
        w = jax.random.uniform(kw, (fan_in, fan_out), jnp.float32, -bound, bound)
        b = jax.random.uniform(kb, (1, fan_out), jnp.float32, -bound, bound)
        return w, b

    k1, k2, k3 = jax.random.split(key, 3)
    w1, b1 = lin_init(k1, out_size_enc, proj_hid)
    w2, b2 = lin_init(k2, proj_hid, proj_hid)
    w3, b3 = lin_init(k3, proj_hid, proj_out)
    nc = _iternorm_num_channels(proj_out, 64)
    return dict(
        w1=w1, b1=b1, g1=jnp.ones((1, proj_hid), jnp.float32),
        be1=jnp.zeros((1, proj_hid), jnp.float32),
        w2=w2, b2=b2, g2=jnp.ones((1, proj_hid), jnp.float32),
        be2=jnp.zeros((1, proj_hid), jnp.float32),
        w3=w3, b3=b3,
        in_weight=jnp.ones((1, proj_out), jnp.float32),
        in_bias=jnp.zeros((1, proj_out), jnp.float32),
        iternorm_nc=nc,
    )


if __name__ == "__main__":
    # Small but lane-realistic shapes: multi-step parallel grids on every call
    # (proj_hid=256 -> 2 weight tiles, proj_out=512 -> 4 group-block tiles).
    B, OUT_SIZE_ENC, PROJ_HID, PROJ_OUT = 16, 32, 256, 512

    key = jax.random.PRNGKey(0)
    kx, kp = jax.random.split(key)
    x = jax.random.normal(kx, (B, OUT_SIZE_ENC), jnp.float32)
    params = make_params(kp, OUT_SIZE_ENC, PROJ_HID, PROJ_OUT)

    # f32 path: exact check against the PyTorch-equivalent reference.
    out = jax.block_until_ready(projector_forward(x, params))
    ref = jax.block_until_ready(projector_reference(x, params))
    if not np.allclose(np.asarray(out), np.asarray(ref), rtol=1e-2, atol=1e-2):
        raise AssertionError("Pallas Projector output does not match reference")

    # bf16-weight path (v6e/v7x MXU throughput + halved weight DMA): smoke run.
    params_bf16 = dict(params)
    for name in ("w1", "w2", "w3"):
        params_bf16[name] = params[name].astype(jnp.bfloat16)
    out_bf16 = np.asarray(
        jax.block_until_ready(projector_forward(x, params_bf16)), np.float32)
    diff = float(np.max(np.abs(out_bf16 - np.asarray(ref))))
    if not (np.isfinite(out_bf16).all() and diff < 1.0):
        raise AssertionError(f"bf16 weight path diverged (max abs diff={diff})")

    print("KERNEL_OK")
</pallas_src>

<mosaic_0001>
module attributes {stable_mosaic.version = 11 : i64} {
  func.func @_linear_bn_relu_kernel(%arg0: i32, %arg1: memref<16x32xf32, #tpu.memory_space<vmem>>, %arg2: memref<32x128xf32, #tpu.memory_space<vmem>>, %arg3: memref<1x128xf32, #tpu.memory_space<vmem>>, %arg4: memref<1x128xf32, #tpu.memory_space<vmem>>, %arg5: memref<1x128xf32, #tpu.memory_space<vmem>>, %arg6: memref<16x128xf32, #tpu.memory_space<vmem>>) attributes {dimension_semantics = [#tpu.dimension_semantics<parallel>], iteration_bounds = array<i64: 2>, scalar_prefetch = 0 : i64, scratch_operands = 0 : i64, tpu.core_type = #tpu.core_type<tc>, window_params = [{pipeline_mode = #tpu.pipeline_mode<synchronous>, transform_indices = @transform_0, window_bounds = array<i64: 16, 32>}, {transform_indices = @transform_1, window_bounds = array<i64: 32, 128>}, {transform_indices = @transform_2, window_bounds = array<i64: 1, 128>}, {transform_indices = @transform_3, window_bounds = array<i64: 1, 128>}, {transform_indices = @transform_4, window_bounds = array<i64: 1, 128>}, {transform_indices = @transform_5, window_bounds = array<i64: 16, 128>}]} {
    %c0 = arith.constant 0 : index
    %c0_0 = arith.constant 0 : index
    %0 = vector.load %arg1[%c0, %c0_0] : memref<16x32xf32, #tpu.memory_space<vmem>>, vector<16x32xf32>
    %c0_1 = arith.constant 0 : index
    %c0_2 = arith.constant 0 : index
    %1 = vector.load %arg2[%c0_1, %c0_2] : memref<32x128xf32, #tpu.memory_space<vmem>>, vector<32x128xf32>
    %cst = arith.constant dense<0.000000e+00> : vector<16x128xf32>
    %2 = tpu.matmul %0, %1, %cst {dimension_numbers = #tpu.dot_dimension_numbers<[1], [0], [0], [1], [0, 0, 1, 1], [], []>} : vector<16x32xf32>, vector<32x128xf32>, vector<16x128xf32> -> vector<16x128xf32>
    %c0_3 = arith.constant 0 : index
    %c0_4 = arith.constant 0 : index
    %3 = vector.load %arg3[%c0_3, %c0_4] : memref<1x128xf32, #tpu.memory_space<vmem>>, vector<1x128xf32>
    %4 = vector.broadcast %3 : vector<1x128xf32> to vector<16x128xf32>
    %5 = arith.addf %2, %4 : vector<16x128xf32>
    %cst_5 = arith.constant dense<0.000000e+00> : vector<128xf32>
    %6 = vector.multi_reduction <add>, %5, %cst_5 [0] : vector<16x128xf32> to vector<128xf32>
    %7 = vector.shape_cast %6 : vector<128xf32> to vector<1x128xf32>
    %cst_6 = arith.constant 1.600000e+01 : f32
    %8 = vector.broadcast %cst_6 : f32 to vector<1x128xf32>
    %9 = arith.divf %7, %8 : vector<1x128xf32>
    %10 = vector.broadcast %9 : vector<1x128xf32> to vector<16x128xf32>
    %11 = arith.subf %5, %10 : vector<16x128xf32>
    %12 = arith.mulf %11, %11 : vector<16x128xf32>
    %cst_7 = arith.constant dense<0.000000e+00> : vector<128xf32>
    %13 = vector.multi_reduction <add>, %12, %cst_7 [0] : vector<16x128xf32> to vector<128xf32>
    %14 = vector.shape_cast %13 : vector<128xf32> to vector<1x128xf32>
    %cst_8 = arith.constant 1.600000e+01 : f32
    %15 = vector.broadcast %cst_8 : f32 to vector<1x128xf32>
    %16 = arith.divf %14, %15 : vector<1x128xf32>
    %c0_9 = arith.constant 0 : index
    %c0_10 = arith.constant 0 : index
    %17 = vector.load %arg4[%c0_9, %c0_10] : memref<1x128xf32, #tpu.memory_space<vmem>>, vector<1x128xf32>
    %cst_11 = arith.constant 9.99999974E-6 : f32
    %18 = vector.broadcast %cst_11 : f32 to vector<1x128xf32>
    %19 = arith.addf %16, %18 : vector<1x128xf32>
    %20 = math.rsqrt %19 : vector<1x128xf32>
    %21 = arith.mulf %17, %20 : vector<1x128xf32>
    %22 = vector.broadcast %21 : vector<1x128xf32> to vector<16x128xf32>
    %23 = arith.mulf %11, %22 : vector<16x128xf32>
    %c0_12 = arith.constant 0 : index
    %c0_13 = arith.constant 0 : index
    %24 = vector.load %arg5[%c0_12, %c0_13] : memref<1x128xf32, #tpu.memory_space<vmem>>, vector<1x128xf32>
    %25 = vector.broadcast %24 : vector<1x128xf32> to vector<16x128xf32>
    %26 = arith.addf %23, %25 : vector<16x128xf32>
    %cst_14 = arith.constant 0.000000e+00 : f32
    %27 = vector.broadcast %cst_14 : f32 to vector<16x128xf32>
    %28 = arith.maximumf %26, %27 : vector<16x128xf32>
    %c0_15 = arith.constant 0 : index
    %c0_16 = arith.constant 0 : index
    %29 = vector.load %arg6[%c0_15, %c0_16] : memref<16x128xf32, #tpu.memory_space<vmem>>, vector<16x128xf32>
    tpu.vector_store %arg6[%c0_15, %c0_16], %28 {strides = array<i32>} : memref<16x128xf32, #tpu.memory_space<vmem>>, vector<16x128xf32>,
    return
  }
  func.func @transform_0(%arg0: i32) -> (i32, i32) {
    %c0_i32 = arith.constant 0 : i32
    %c0_i32_0 = arith.constant 0 : i32
    %c0_i32_1 = arith.constant 0 : i32
    return %c0_i32, %c0_i32_0 : i32, i32
  }
  func.func @transform_1(%arg0: i32) -> (i32, i32) {
    %c0_i32 = arith.constant 0 : i32
    %c0_i32_0 = arith.constant 0 : i32
    return %c0_i32, %arg0 : i32, i32
  }
  func.func @transform_2(%arg0: i32) -> (i32, i32) {
    %c0_i32 = arith.constant 0 : i32
    %c0_i32_0 = arith.constant 0 : i32
    return %c0_i32, %arg0 : i32, i32
  }
  func.func @transform_3(%arg0: i32) -> (i32, i32) {
    %c0_i32 = arith.constant 0 : i32
    %c0_i32_0 = arith.constant 0 : i32
    return %c0_i32, %arg0 : i32, i32
  }
  func.func @transform_4(%arg0: i32) -> (i32, i32) {
    %c0_i32 = arith.constant 0 : i32
    %c0_i32_0 = arith.constant 0 : i32
    return %c0_i32, %arg0 : i32, i32
  }
  func.func @transform_5(%arg0: i32) -> (i32, i32) {
    %c0_i32 = arith.constant 0 : i32
    %c0_i32_0 = arith.constant 0 : i32
    return %c0_i32, %arg0 : i32, i32
  }
}

</mosaic_0001>

<bundles_post_ra>
// kernel: tpu_custom_call.1
= control target key start
LH: loop header
LB: loop body
LE: loop exit
PB: predicated region body
PF: predicated region fallthrough
CT: control target
= control target key end

     0   :  { %10 = vsyncpa [#allocation3], 0  ;;  %s1064_s0 = inlined_call_operand.hbm [shape: f32[16,32], index: 0, kind: input, shape index: {}]   ;;  %s1065_s1 = inlined_call_operand.hbm [shape: f32[32,256], index: 1, kind: input, shape index: {}]   ;;  %s1066_s2 = inlined_call_operand.vmem [shape: f32[1,256], index: 2, kind: input, shape index: {}]   ;;  %s1067_s3 = inlined_call_operand.vmem [shape: f32[1,256], index: 3, kind: input, shape index: {}]   ;;  %s1068_s4 = inlined_call_operand.vmem [shape: f32[1,256], index: 4, kind: input, shape index: {}]   ;;  %s1069_s5 = inlined_call_operand.hbm [shape: f32[16,256], index: 5, kind: output, shape index: {}]  }
   0x1   :  { %11 = vsyncpa [#allocation6], 0 }
   0x2   :  { %13 = vsyncpa [#allocation6 + $0x1], 0 }
   0x3   :  { %14 = vsyncpa [#allocation4], 0 }
   0x4   :  { %16 = vsyncpa [#allocation4 + $0x1], 0  ;;  %s842_s18 = smov 0   ;;  %s844_s19 = smov 0  }
   0x5   :  { %s846_s20 = smov 0   ;;  %s848_s21 = smov 0  }
   0x6 LB: > { %s863_s22 = sadd.s32 4294967295, %s801_s21   ;;  %s565_s23 = sadd.s32 4294967294, %s801_s21   ;;  %s801_s21 = sphi %s848_s21, %s1095_s21   ;;  %s797_s20 = sphi %s846_s20, %s1094_s20   ;;  %s793_s19 = sphi %s844_s19, %s1093_s19   ;;  %s789_s18 = sphi %s842_s18, %s1092_s18  }
   0x7   : > { %s867_s24 = sadd.s32 1, %s801_s21   ;;  %s50_s25 = sadd.s32 1, %s797_s20 }
   0x8   : > { %s47_s26 = ssub.s32 %s801_s21, %s867_s24  ;;  %p57_p0 = scmp.ne.s32.totalorder %s797_s20, %s793_s19 }
   0x9   : > { %p48_p1 = scmp.eq.s32.totalorder %s47_s26, 0  ;;  %p58_p2 = scmp.eq.s32.totalorder %s801_s21, 0 }
   0xa   : > { %p63_p3 = scmp.ne.s32.totalorder %s793_s19, %s789_s18  ;;  %p1070_p4 = scmp.eq.s32.totalorder %s863_s22, 0 }
   0xb   : > { %s879_s27 = scalar_select %p48_p1, %s797_s20, %s50_s25  }
   0xc   : > { %p881_p5 = por %p58_p2, %p57_p0  ;;  %p887_p6 = por %p1070_p4, %p63_p3 }
   0xd   : > { %p165_p7 = scmp.eq.s32.totalorder %s863_s22, 1  ;;  %p171_p8 = scmp.eq.s32.totalorder %s565_s23, 1 }
   0xe   : > { %s1075_s28 = scalar_select %p881_p5, 1, 0 }
   0xf   : > { %s1076_s29 = scalar_select %p887_p6, 1, 0 }
  0x10   : > { %p566_p9 = scmp.ge.s32.totalorder %s801_s21, 1  ;;  %p178_p10 = scmp.lt.s32.totalorder %s801_s21, 3 }
  0x11   : > { %p894_p11 = por %p165_p7, %p57_p0  ;;  %p898_p12 = por %p171_p8, %p63_p3 }
  0x12   : > { %p902_p13 = pnand %p566_p9, %p178_p10  ;;  %s803_s8 = smov [#allocation2]  }
  0x13   : > { %s1077_s30 = scalar_select %p894_p11, 1, 0 }
  0x14   : > { %s1078_s6 = scalar_select %p898_p12, 1, 0 }
  0x15   : > { %s1079_s7 = scalar_select %p902_p13, 1, 0 }
  0x16   : > { %p616_p1 = pneg %p902_p13  ;;  %s190_s9 = sshll.u32 %s803_s8, 4  ;;  %s191_s9 = int_to_ptr.vmem [resolvable:$true] %s190_s9 }
  0x17   : > { %s204_s11 = sand.u32 1, %s797_s20   ;;  %s673_s14 = scalar_lea.hbm %s1064_s0, 256 }
  0x18   : > { %p910_p2 = pnand %p616_p1, %p1070_p4  ;;  %p674_p7 = scmp.ne.s32.totalorder %s1064_s0, %s673_s14 }
  0x19   : > { %p680_p1 = scmp.lt.u32.totalorder %s673_s14, %s1064_s0 }
  0x1a   : > { %p675_p8 = pneg %p910_p2 }
  0x1c   : > { %p676_p9 = pnand %p675_p8, %p674_p7 }
  0x1e   : > { %p677_p10 = pneg %p676_p9 }
  0x20   : > { %p682_p4 = pnand %p680_p1, %p677_p10 }
  0x22   : > { %685 = shalt.err (!%p682_p4)
}
  0x23   : > { %s686_s25 = scalar_lea.vmem %s191_s9, 256  ;;  %p694_p11 = scmp.lt.s32.totalorder %s191_s9, %s191_s9 }
  0x24   : > { %p687_p0 = scmp.ne.s32.totalorder %s191_s9, %s686_s25  ;;  %p695_p6 = scmp.lt.s32.totalorder %s686_s25, %s686_s25 }
  0x26   : > { %p689_p3 = pnand %p687_p0, %p675_p8  ;;  %p696_p13 = por %p695_p6, %p694_p11 }
  0x28   : > { %p690_p12 = pneg %p689_p3 }
  0x2a   : > { %p697_p5 = pnand %p696_p13, %p690_p12 }
  0x2c   : > { %700 = shalt.err (!%p697_p5)
}
  0x2d   : > { %s1074_s26 = smov 128   ;;  %s805_s8 = smov 8  }
  0x2e   : > { %619 = dma.hbm_to_vmem [thread:$0]  (!%p910_p2), %s1064_s0, 256, %s191_s9, [#allocation3], %s1074_s26, %s1074_s26, %s805_s8  }
  0x2f   : > { %p1081_p4 = scmp.ne.s32.totalorder %s1075_s28, 0  ;;  %p1082_p0 = scmp.lt.s32.totalorder %s801_s21, 2 }
  0x30   : > { %s569_s15 = sshll.u32 %s204_s11, 5  ;;  %s570_s16 = sshll.u32 %s801_s21, 7 }
  0x31   : > { %p940_p3 = pnand %p1082_p0, %p1081_p4  ;;  %s948_s10 = scalar_lea.hbm %s1065_s1, %s570_s16 }
  0x32   : > { %s208_s9 = scalar_lea.vmem [#allocation5], %s569_s15  ;;  %s952_s25 = scalar_lea.sflag [#allocation6], %s204_s11 }
  0x33   : > { %s214_s28 = sshll.u32 %s208_s9, 4  ;;  %s701_s12 = scalar_lea.hbm %s948_s10, 512  ;;  %s950_s28 = int_to_ptr.vmem [resolvable:$true] %s214_s28 }
  0x34   : > { %p702_p5 = scmp.ne.s32.totalorder %s948_s10, %s701_s12  ;;  %p703_p6 = pneg %p940_p3 }
  0x35   : > { %s706_s17 = scalar_lea.hbm %s1065_s1, 1024  ;;  %p707_p13 = scmp.lt.u32.totalorder %s948_s10, %s1065_s1 }
  0x36   : > { %p704_p11 = pnand %p703_p6, %p702_p5  ;;  %p708_p2 = scmp.lt.u32.totalorder %s706_s17, %s701_s12 }
  0x37   : > { %p710_p8 = scmp.lt.u32.totalorder %s701_s12, %s948_s10 }
  0x38   : > { %p705_p12 = pneg %p704_p11  ;;  %p709_p7 = por %p708_p2, %p707_p13 }
  0x3a   : > { %p711_p9 = por %p710_p8, %p709_p7 }
  0x3c   : > { %p712_p10 = pnand %p711_p9, %p705_p12 }
  0x3e   : > { %715 = shalt.err (!%p712_p10)
}
  0x3f   : > { %s716_s11 = scalar_lea.vmem %s950_s28, 512  ;;  %s806_s15 = smov [#allocation5]  }
  0x40   : > { %p717_p1 = scmp.ne.s32.totalorder %s950_s28, %s716_s11  ;;  %s721_s9 = sshll.u32 %s806_s15, 4  ;;  %s722_s9 = int_to_ptr.vmem [resolvable:$false] %s721_s9 }
  0x41   : > { %s723_s26 = scalar_lea.vmem %s722_s9, 1024  ;;  %p724_p5 = scmp.lt.s32.totalorder %s950_s28, %s722_s9 }
  0x42   : > { %p719_p4 = pnand %p717_p1, %p703_p6  ;;  %p725_p11 = scmp.lt.s32.totalorder %s723_s26, %s716_s11 }
  0x44   : > { %p720_p0 = pneg %p719_p4  ;;  %p726_p13 = por %p725_p11, %p724_p5 }
  0x46   : > { %p727_p2 = pnand %p726_p13, %p720_p0 }
  0x48   : > { %730 = shalt.err (!%p727_p2)
}
  0x49   : > { %s807_s12 = smov 256   ;;  %s1084_s13 = smov 128  }
  0x4a   : > { %623 = dma.hbm_to_vmem [thread:$0]  (!%p940_p3), %s948_s10, 512, %s950_s28, %s952_s25, %s807_s12, %s1084_s13, %s805_s8  }
  0x4b   : > { %p1085_p6 = scmp.ne.s32.totalorder %s1079_s7, 0 }
  0x4c   : > { %p1086_p12 = scmp.eq.s32.totalorder (!%p1085_p6), %s863_s22, 0 }
  0x4d   : > { %244 = sbr.rel (%p1085_p6) target bundleno = 390 (0x186), region = 40 }
  0x54   : > { %776 = dma.done.wait (%p1086_p12), [#allocation3], 256   ;;  %p1087_p7 = pmov %p1086_p12 }
  0x55   : > { %s989_s16 = sand.u32 1, %s793_s19   ;;  %p1088_p8 = scmp.ne.s32.totalorder %s1076_s29, 0 }
  0x56   : > { %778 = vsyncadd (%p1087_p7), [#allocation3], 4294967040  ;;  %s573_s14 = sshll.u32 %s989_s16, 5  ;;  %s251_s17 = scalar_lea.sflag [#allocation6], %s989_s16 }
  0x57   : > { %s254_s23 = scalar_lea.vmem [#allocation5], %s573_s14 }
  0x58   : > { %780 = dma.done.wait (%p1088_p8), %s251_s17, 512  }
  0x59   : > { %782 = vsyncadd (%p1088_p8), %s251_s17, 4294966784  ;;  %vm312_vm0 = vcmask 261120   ;;  %v301_v0 = vld [vmem:[%s254_s23] sm:$0xff]  ;;  %v302_v1 = vld [vmem:[%s254_s23 + $0x8] sm:$0xff]  ;;  %p290_p3 = scmp.lt.s32.totalorder %s863_s22, 1  ;;  %v420_v34 = vlaneseq  ;;  %s574_s15 = sshll.u32 %s989_s16, 4 }
  0x5a   : > { %v303_v2 = vld [vmem:[%s254_s23 + $0x10] sm:$0xff]  ;;  %v600_v3 = vpack.c.bf16 %v302_v1, %v301_v0  ;;  %v304_v4 = vld [vmem:[%s254_s23 + $0x18] sm:$0xff]  ;;  %s289_s13 = scalar_lea.vmem [#allocation7], %s574_s15  ;;  %s580_s17 = sshll.u32 %s863_s22, 7 }
  0x5b   : > { %v299_v5 = vld [vmem:[#allocation2] sm:$0xff]  ;;  %v604_v6 = vpack.c.bf16 %v304_v4, %v303_v2  ;;  %v300_v7 = vld [vmem:[#allocation2 + $0x8] sm:$0xff]  ;;  %s999_s29 = scalar_select %p290_p3, %s863_s22, 1  ;;  %v421_v35 = vshrl.u32 %v420_v34, 7 }
  0x5c   : > { %597 = vmatprep.mubr.msk.f32.mxu0 %vm312_vm0, %v299_v5  ;;  %601 = vmatprep.subr.bf16.mxu0 %v600_v3  ;;  %s453_s14 = sshll.u32 %s289_s13, 4  ;;  %s441_s8 = scalar_lea.sflag [#allocation4], %s989_s16  ;;  %s1015_s14 = int_to_ptr.vmem [resolvable:$true] %s453_s14 }
  0x5d   : > { %603 = vmatpush3.bf16.msra.mxu0 %v600_v3  ;;  %s292_s10 = scalar_lea.vmem %s1066_s2, %s999_s29  ;;  %s295_s11 = scalar_lea.vmem %s1067_s3, %s999_s29  ;;  %v422_v37 = vsub.s32 0, %v421_v35 }
  0x5e   : > { %605 = vmatprep.subr.bf16.mxu0 %v604_v6  ;;  %v575_v8 = vld [vmem:[%s292_s10] ss:$0 sm:$0xff]  ;;  %s298_s12 = scalar_lea.vmem %s1068_s4, %s999_s29  ;;  %s1020_s29 = scalar_lea.hbm %s1069_s5, %s580_s17 }
  0x5f   : > { %v415_v36 = vld [vmem:[%s295_s11] sm:$0x1]  ;;  %s731_s10 = scalar_lea.vmem %s1015_s14, 256  ;;  %p1089_p10 = scmp.ne.s32.totalorder %s1077_s30, 0 }
  0x60   : > { %v578_v41 = vld [vmem:[%s298_s12] ss:$0 sm:$0xff]  ;;  %p732_p9 = scmp.ne.s32.totalorder %s1015_s14, %s731_s10  ;;  %s808_s22 = smov [#allocation7]  }
  0x61   : > { %607 = vmatpush3.bf16.msra.mxu0 %v604_v6  ;;  %s735_s28 = sshll.u32 %s808_s22, 4  ;;  %s736_s28 = int_to_ptr.vmem [resolvable:$false] %s735_s28 }
  0x62   : > { %p733_p1 = pnand %p732_p9, %p1089_p10  ;;  %s737_s25 = scalar_lea.vmem %s736_s28, 512 }
  0x63   : > { %p738_p0 = scmp.lt.s32.totalorder %s1015_s14, %s736_s28  ;;  %p739_p5 = scmp.lt.s32.totalorder %s737_s25, %s731_s10 }
  0x64   : > { %598 = vmatmul.mubr.msk.f32.vlgmr.msra.gmra.mrb[0].mxu0 %vm312_vm0, %v300_v7  ;;  %p734_p4 = pneg %p733_p1 }
  0x65   : > { %p740_p11 = por %p739_p5, %p738_p0 }
  0x67   : > { %p741_p13 = pnand %p740_p11, %p734_p4 }
 0x137   : > { %v599_v9 = vpop.f32.mrb[0].mxu0 }
 0x138   : > { %v391_v10 = vadd.f32 %v599_v9, %v575_v8  ;;  %v385_v11 = vpop.f32.mrb[1].mxu0 }
 0x139   : > { %v386_v12 = vadd.f32 %v575_v8, %v385_v11 }
 0x13b   : > { %v394_v13 = vadd.f32 %v391_v10, %v386_v12 }
 0x13d   : > { %v395_v14 = vrot.slane %v394_v13, 4 }
 0x13f   : > { %v396_v15 = vadd.f32 %v395_v14, %v394_v13 }
 0x141   : > { %v397_v16 = vrot.slane %v396_v15, 2 }
 0x143   : > { %v398_v17 = vadd.f32 %v397_v16, %v396_v15 }
 0x145   : > { %v399_v18 = vrot.slane %v398_v17, 1 }
 0x147   : > { %v400_v19 = vadd.f32 %v399_v18, %v398_v17 }
 0x149   : > { %v402_v20 = vmul.f32 0.0625, %v400_v19 }
 0x14b   : > { %v403_v21 = vsub.f32 %v386_v12, %v402_v20  ;;  %v404_v22 = vsub.f32 %v391_v10, %v402_v20 }
 0x14d   : > { %v405_v23 = vmul.f32 %v403_v21, %v403_v21  ;;  %v406_v24 = vmul.f32 %v404_v22, %v404_v22 }
 0x14f   : > { %v407_v25 = vadd.f32 %v406_v24, %v405_v23 }
 0x151   : > { %v408_v26 = vrot.slane %v407_v25, 4 }
 0x153   : > { %v409_v27 = vadd.f32 %v408_v26, %v407_v25 }
 0x155   : > { %v410_v28 = vrot.slane %v409_v27, 2 }
 0x157   : > { %v411_v29 = vadd.f32 %v410_v28, %v409_v27 }
 0x159   : > { %v412_v30 = vrot.slane %v411_v29, 1 }
 0x15b   : > { %v413_v31 = vadd.f32 %v412_v30, %v411_v29 }
 0x15d   : > { %v414_v32 = vmul.f32 0.0625, %v413_v31 }
 0x15f   : > { %v416_v33 = vadd.f32 1e-05, %v414_v32 }
 0x161   : > { %671 = vrsqrt.f32 %v416_v33 }
 0x16b   : > { %v672_v38 = vpop.eup %671 }
 0x16c   : > { %v418_v39 = vmul.f32 %v672_v38, %v415_v36 }
 0x16e   : > { %v423_v40 = vrot.slane %v418_v39, %v422_v37 }
 0x170   : > { %v425_v42 = vmul.f32 %v423_v40, %v403_v21  ;;  %v426_v43 = vmul.f32 %v423_v40, %v404_v22 }
 0x172   : > { %v434_v44 = vadd.f32 %v578_v41, %v425_v42  ;;  %v435_v45 = vadd.f32 %v578_v41, %v426_v43 }
 0x174   : > { %v436_v46 = vmax.f32 %v434_v44, 0.0  ;;  %v437_v47 = vmax.f32 %v435_v45, 0.0 }
 0x176   : > { %438 = vst [vmem:[%s289_s13] sm:$0xff] %v436_v46  ;;  %439 = vst [vmem:[%s289_s13 + $0x8] sm:$0xff] %v437_v47 }
 0x177   : > { %744 = shalt.err (!%p741_p13)
}
 0x178   : > { %s745_s11 = scalar_lea.hbm %s1020_s29, 256  ;;  %s749_s26 = scalar_lea.hbm %s1069_s5, 512 }
 0x179   : > { %p746_p2 = scmp.ne.s32.totalorder %s1020_s29, %s745_s11  ;;  %p750_p7 = scmp.lt.u32.totalorder %s1020_s29, %s1069_s5 }
 0x17a   : > { %p751_p8 = scmp.lt.u32.totalorder %s749_s26, %s745_s11  ;;  %p753_p9 = scmp.lt.u32.totalorder %s745_s11, %s1020_s29 }
 0x17b   : > { %p747_p6 = pnand %p746_p2, %p1089_p10 }
 0x17c   : > { %p752_p3 = por %p751_p8, %p750_p7 }
 0x17d   : > { %p748_p12 = pneg %p747_p6 }
 0x17e   : > { %p754_p1 = por %p753_p9, %p752_p3 }
 0x180   : > { %p755_p4 = pnand %p754_p1, %p748_p12 }
 0x182   : > { %758 = shalt.err (!%p755_p4)
}
 0x183   : > { %s809_s17 = smov 128   ;;  %s810_s23 = smov 256  }
 0x184   : > { %s811_s7 = smov 8  }
 0x185   : > { %614 = dma.vmem_to_hbm [thread:$0]  (%p1089_p10), %s1015_s14, 256, %s1020_s29, %s441_s8, %s809_s17, %s810_s23, %s811_s7  }
 0x186 PF: > { %s468_s10 = sand.u32 1, %s789_s18   ;;  %p1090_p0 = scmp.ne.s32.totalorder %s1078_s6, 0 }
 0x187   : > { %p1091_p5 = scmp.ge.s32.totalorder %s801_s21, 2  ;;  %s469_s22 = scalar_lea.sflag [#allocation4], %s468_s10 }
 0x189   : > { %p625_p11 = pnand %p1091_p5, %p1090_p0 }
 0x18b   : > { %784 = dma.done.wait (!%p625_p11), %s469_s22, 256  }
 0x18c   : > { %786 = vsyncadd (!%p625_p11), %s469_s22, 4294967040  ;;  %p19_p13 = scmp.ge.s32.totalorder %s867_s24, 4   ;;  %s1092_s18 = smov %s793_s19 }
 0x18d   : > { %s1093_s19 = smov %s797_s20  ;;  %s1094_s20 = smov %s879_s27 }
 0x18e   : > { %s1095_s21 = smov %s867_s24  ;;  %21 = sbr.rel (!%p19_p13) target bundleno = 6 (0x6), region = 99 }
 0x195   :  { %474 = vsyncpa [#allocation3], 1 }
 0x196   :  { %476 = vsyncpa [#allocation3 + $0x1], 1 }
 0x197   :  { %477 = vsyncpa [#allocation6], 1 }
 0x198   :  { %479 = vsyncpa [#allocation6 + $0x1], 1 }
 0x199   :  { %480 = vsyncpa [#allocation4], 1 }
 0x19a   :  { %482 = vsyncpa [#allocation4 + $0x1], 1 }

</bundles_post_ra>
